<compile_context>
chip_gen: v7x
topology: tpu7x:2x2x1
jax: 0.10.0
libtpu: 0.0.40
codegen_flags: <defaults>
</compile_context>

<pallas_src>
import functools

import jax
import jax.numpy as jnp
from jax import lax
from jax.experimental import pallas as pl
from jax.experimental.pallas import tpu as pltpu

_LANE = 128


def _round_up(n, m):
    return ((n + m - 1) // m) * m


def _cdiv(a, b):
    return (a + b - 1) // b


def _tap_kernel(x_ref, o_ref, acc_ref, *, inv_t, n_frames, tile_t, need_mask):
    """Accumulate one (TB, TT, TC) tile; finalize on the last frames-tile."""
    t = pl.program_id(2)

    @pl.when(t == 0)
    def _():
        acc_ref[...] = jnp.zeros_like(acc_ref)

    # Accumulate in f32 regardless of input dtype (safe for bf16/fp8 inputs).
    x = x_ref[...].astype(jnp.float32)                       # (TB, TT, TC)
    if need_mask:
        # Global frame index; zero frames past the real sequence length so the ragged
        # last T tile (and its unspecified out-of-bounds contents) never contaminates
        # the sum.  Pure VPU select — free relative to the HBM-bound load.
        frame = t * tile_t + lax.broadcasted_iota(jnp.int32, x.shape, 1)
        x = jnp.where(frame < n_frames, x, 0.0)
    acc_ref[...] += jnp.sum(x, axis=1)                       # (TB, TC)

    @pl.when(t == pl.num_programs(2) - 1)
    def _():
        # inv_t is 1 / T_real (NOT 1 / tile_T): correct under T tiling + masking.
        o_ref[...] = (acc_ref[...] * inv_t).astype(o_ref.dtype)


def temporal_average_pooling(x, *, in_tile_bytes=12 * 1024 * 1024):
    """Temporal Average Pooling: (B, T, C) -> (B, C), mean over frames (T)."""
    B, T, C = x.shape
    assert T > 0, "Temporal_Average_Pooling requires at least one frame (T > 0)."
    dtype = x.dtype
    itemsize = jnp.dtype(dtype).itemsize
    sublane = {4: 8, 2: 16, 1: 32}.get(itemsize, 8)

    # ---- Lane-densify narrow channel dims: (B, T, C) -> (B, T//k, k*C).
    # Row-major merge of adjacent dims: pure metadata reshape, no HBM copy.
    fold_k = 1
    if C < _LANE and _LANE % C == 0 and T % (_LANE // C) == 0:
        fold_k = _LANE // C
    T_eff, C_eff = T // fold_k, C * fold_k
    if fold_k > 1:
        x = x.reshape(B, T_eff, C_eff)

    # ---- Batch tile: sublane-packed multiple, or full extent when B is small.
    TB = B if B <= sublane else sublane
    n_b = _cdiv(B, TB)                    # ragged last block handled by Pallas

    # ---- Channel tile: give both v7x TensorCores work when the batch grid collapses
    # to a single "parallel" block (channels are independent for a mean over T).
    TC = C_eff
    if n_b < 2 and C_eff >= 2 * _LANE and C_eff % (2 * _LANE) == 0:
        TC = C_eff // 2
    n_c = C_eff // TC

    # ---- Frames tile: largest sublane multiple keeping one input buffer <= cap,
    # or the full (possibly non-multiple) frames extent when it already fits.
    c_pad = _round_up(TC, _LANE)          # real (lane-padded) VMEM tile width
    tt_cap = max(
        sublane,
        (in_tile_bytes // max(1, TB * c_pad * itemsize)) // sublane * sublane,
    )
    TT = T_eff if T_eff <= tt_cap else tt_cap
    n_t = _cdiv(T_eff, TT)
    need_mask = (T_eff % TT) != 0         # only ragged T pays for the in-kernel select

    grid = (n_b, n_c, n_t)

    # ---- VMEM budget: double-buffered inputs + outputs + accumulator + headroom,
    # computed on lane/sublane-padded footprints (no blanket floor).
    out_dtype = jnp.float32 if fold_k > 1 else dtype
    out_itemsize = jnp.dtype(out_dtype).itemsize
    out_sublane = {4: 8, 2: 16, 1: 32}.get(out_itemsize, 8)
    in_tile = TB * _round_up(TT, sublane) * c_pad * itemsize
    out_tile = _round_up(TB, out_sublane) * c_pad * out_itemsize
    acc_tile = _round_up(TB, 8) * c_pad * 4
    vmem_bytes = 2 * in_tile + 2 * out_tile + acc_tile + (4 << 20)

    kernel = functools.partial(
        _tap_kernel, inv_t=1.0 / T, n_frames=T_eff, tile_t=TT, need_mask=need_mask)

    out = pl.pallas_call(
        kernel,
        out_shape=jax.ShapeDtypeStruct((B, C_eff), out_dtype),
        grid_spec=pltpu.PrefetchScalarGridSpec(
            num_scalar_prefetch=0,
            grid=grid,
            in_specs=[pl.BlockSpec((TB, TT, TC), lambda b, c, t: (b, t, c))],
            out_specs=pl.BlockSpec((TB, TC), lambda b, c, t: (b, c)),
            scratch_shapes=[pltpu.VMEM((TB, TC), jnp.float32)],
        ),
        compiler_params=pltpu.CompilerParams(
            dimension_semantics=("parallel", "parallel", "arbitrary"),
            vmem_limit_bytes=int(vmem_bytes),
        ),
        cost_estimate=pl.CostEstimate(
            flops=B * T * C,
            transcendentals=0,
            bytes_accessed=B * T * C * itemsize + B * C_eff * out_itemsize,
        ),
    )(x)

    if fold_k > 1:
        # Tiny (B, 128) fold of the per-phase partial means back to (B, C).
        out = out.reshape(B, fold_k, C).sum(axis=1).astype(dtype)
    return out


if __name__ == "__main__":
    key = jax.random.PRNGKey(0)

    # Shape matching the PyTorch module's (#batch, frames, channels) layout.
    # Exercises the lane-densified path (C=32 -> fold_k=4).
    B, T, C = 2, 8, 32
    x = jax.random.normal(key, (B, T, C), dtype=jnp.float32)
    out = jax.block_until_ready(temporal_average_pooling(x))
    ref = jnp.mean(x, axis=1)
    assert out.shape == (B, C), out.shape
    assert out.dtype == x.dtype
    assert jnp.allclose(out, ref, atol=1e-5, rtol=1e-5)

    # Un-densified path (T=37 not divisible by k), ragged batch blocks (B=12, TB=8),
    # single full-extent frames tile — all without any jnp.pad copy of x.
    B2, T2, C2 = 12, 37, 64
    x2 = jax.random.normal(jax.random.PRNGKey(1), (B2, T2, C2), dtype=jnp.float32)
    out2 = jax.block_until_ready(temporal_average_pooling(x2))
    ref2 = jnp.mean(x2, axis=1)
    assert out2.shape == (B2, C2), out2.shape
    assert jnp.allclose(out2, ref2, atol=1e-5, rtol=1e-5)

    # bf16 path with forced frame tiling + in-kernel ragged-T masking (tiny tile cap
    # makes T=50 span multiple 16-frame tiles so the masked accumulate is exercised).
    B3, T3, C3 = 4, 50, 128
    x3 = jax.random.normal(jax.random.PRNGKey(2), (B3, T3, C3), dtype=jnp.bfloat16)
    out3 = jax.block_until_ready(temporal_average_pooling(x3, in_tile_bytes=16 * 1024))
    ref3 = jnp.mean(x3.astype(jnp.float32), axis=1).astype(jnp.bfloat16)
    assert out3.shape == (B3, C3), out3.shape
    assert jnp.allclose(out3.astype(jnp.float32), ref3.astype(jnp.float32),
                        atol=2e-2, rtol=2e-2)

    print("KERNEL_OK")
</pallas_src>

<mosaic_0001>
module attributes {stable_mosaic.version = 11 : i64} {
  func.func @_tap_kernel(%arg0: i32, %arg1: i32, %arg2: i32, %arg3: memref<2x2x128xf32, #tpu.memory_space<vmem>>, %arg4: memref<2x128xf32, #tpu.memory_space<vmem>>, %arg5: memref<2x128xf32, #tpu.memory_space<vmem>>) attributes {dimension_semantics = [#tpu.dimension_semantics<parallel>, #tpu.dimension_semantics<parallel>, #tpu.dimension_semantics<arbitrary>], iteration_bounds = array<i64: 1, 1, 1>, scalar_prefetch = 0 : i64, scratch_operands = 1 : i64, tpu.core_type = #tpu.core_type<tc>, window_params = [{transform_indices = @transform_0, window_bounds = array<i64: 2, 2, 128>}, {transform_indices = @transform_1, window_bounds = array<i64: 2, 128>}]} {
    %c0_i32 = arith.constant 0 : i32
    %0 = arith.cmpi eq, %arg2, %c0_i32 : i32
    %1 = arith.extui %0 : i1 to i32
    %c0_i32_0 = arith.constant 0 : i32
    %2 = arith.cmpi ne, %1, %c0_i32_0 : i32
    scf.if %2 {
      %cst_9 = arith.constant 0.000000e+00 : f32
      %11 = vector.broadcast %cst_9 : f32 to vector<2x128xf32>
      %c0_10 = arith.constant 0 : index
      %c0_11 = arith.constant 0 : index
      %12 = vector.load %arg5[%c0_10, %c0_11] : memref<2x128xf32, #tpu.memory_space<vmem>>, vector<2x128xf32>
      tpu.vector_store %arg5[%c0_10, %c0_11], %11 {strides = array<i32>} : memref<2x128xf32, #tpu.memory_space<vmem>>, vector<2x128xf32>,
    } else {
    }
    %c0 = arith.constant 0 : index
    %c0_1 = arith.constant 0 : index
    %c0_2 = arith.constant 0 : index
    %3 = vector.load %arg3[%c0, %c0_1, %c0_2] : memref<2x2x128xf32, #tpu.memory_space<vmem>>, vector<2x2x128xf32>
    %c0_3 = arith.constant 0 : index
    %c0_4 = arith.constant 0 : index
    %4 = vector.load %arg5[%c0_3, %c0_4] : memref<2x128xf32, #tpu.memory_space<vmem>>, vector<2x128xf32>
    %cst = arith.constant dense<0.000000e+00> : vector<2x128xf32>
    %5 = vector.multi_reduction <add>, %3, %cst [1] : vector<2x2x128xf32> to vector<2x128xf32>
    %6 = arith.addf %4, %5 : vector<2x128xf32>
    %c0_5 = arith.constant 0 : index
    %c0_6 = arith.constant 0 : index
    %7 = vector.load %arg5[%c0_5, %c0_6] : memref<2x128xf32, #tpu.memory_space<vmem>>, vector<2x128xf32>
    tpu.vector_store %arg5[%c0_5, %c0_6], %6 {strides = array<i32>} : memref<2x128xf32, #tpu.memory_space<vmem>>, vector<2x128xf32>,
    %c0_i32_7 = arith.constant 0 : i32
    %8 = arith.cmpi eq, %arg2, %c0_i32_7 : i32
    %9 = arith.extui %8 : i1 to i32
    %c0_i32_8 = arith.constant 0 : i32
    %10 = arith.cmpi ne, %9, %c0_i32_8 : i32
    scf.if %10 {
      %c0_9 = arith.constant 0 : index
      %c0_10 = arith.constant 0 : index
      %11 = vector.load %arg5[%c0_9, %c0_10] : memref<2x128xf32, #tpu.memory_space<vmem>>, vector<2x128xf32>
      %cst_11 = arith.constant 1.250000e-01 : f32
      %12 = vector.broadcast %cst_11 : f32 to vector<2x128xf32>
      %13 = arith.mulf %11, %12 : vector<2x128xf32>
      %c0_12 = arith.constant 0 : index
      %c0_13 = arith.constant 0 : index
      %14 = vector.load %arg4[%c0_12, %c0_13] : memref<2x128xf32, #tpu.memory_space<vmem>>, vector<2x128xf32>
      tpu.vector_store %arg4[%c0_12, %c0_13], %13 {strides = array<i32>} : memref<2x128xf32, #tpu.memory_space<vmem>>, vector<2x128xf32>,
    } else {
    }
    return
  }
  func.func @transform_0(%arg0: i32, %arg1: i32, %arg2: i32) -> (i32, i32, i32) {
    %c0_i32 = arith.constant 0 : i32
    return %arg0, %arg2, %arg1 : i32, i32, i32
  }
  func.func @transform_1(%arg0: i32, %arg1: i32, %arg2: i32) -> (i32, i32) {
    %c0_i32 = arith.constant 0 : i32
    return %arg0, %arg1 : i32, i32
  }
}

</mosaic_0001>

<bundles_post_ra>
// kernel: tpu_custom_call.1
= control target key start
LH: loop header
LB: loop body
LE: loop exit
PB: predicated region body
PF: predicated region fallthrough
CT: control target
= control target key end

     0   :  { %6 = vsyncpa [#allocation4], 0  ;;  %s166_s0 = inlined_call_operand.hbm [shape: f32[2,2,128], index: 0, kind: input, shape index: {}]   ;;  %s167_s1 = inlined_call_operand.hbm [shape: f32[2,128], index: 1, kind: output, shape index: {}]  }
   0x1   :  { %7 = vsyncpa [#allocation5], 0  ;;  %s127_s6 = smov [#allocation3]   ;;  %s79_s10 = scalar_lea.hbm %s166_s0, 64 }
   0x2   :  { %s13_s7 = sshll.u32 %s127_s6, 4  ;;  %p80_p0 = scmp.ne.s32.totalorder %s166_s0, %s79_s10  ;;  %s14_s7 = int_to_ptr.vmem [resolvable:$true] %s13_s7 }
   0x3   :  { %p83_p1 = scmp.lt.u32.totalorder %s79_s10, %s166_s0 }
   0x5   :  { %p85_p2 = pnand %p83_p1, %p80_p0 }
   0x7   :  { %88 = shalt.err (!%p85_p2)
}
   0x8   :  { %s89_s15 = scalar_lea.vmem %s14_s7, 64  ;;  %p94_p4 = scmp.lt.s32.totalorder %s14_s7, %s14_s7 }
   0x9   :  { %p90_p3 = scmp.ne.s32.totalorder %s14_s7, %s89_s15  ;;  %p95_p5 = scmp.lt.s32.totalorder %s89_s15, %s89_s15 }
   0xb   :  { %p96_p6 = por %p95_p5, %p94_p4 }
   0xd   :  { %p97_p7 = pnand %p96_p6, %p90_p3 }
   0xf   :  { %100 = shalt.err (!%p97_p7)
}
  0x10   :  { %s128_s16 = smov 32   ;;  %s129_s17 = smov 2  }
  0x11   :  { %19 = dma.hbm_to_vmem [thread:$0]  %s166_s0, 64, %s14_s7, [#allocation4], %s128_s16, %s128_s16, %s129_s17  }
  0x12   :  { %123 = dma.done.wait [#allocation4], 64  }
  0x13   :  { %124 = vsyncadd [#allocation4], 4294967232  ;;  %v130_v0 = vmov 0.0   ;;  %vm31_vm0 = vcmask 1041408   ;;  %v28_v1 = vld [vmem:[#allocation3] sm:$0x3] }
  0x14   :  { %27 = vst [vmem:[#allocation2] sm:$0x3] %v130_v0  ;;  %v29_v2 = vld [vmem:[#allocation3 + $0x2] sm:$0x3]  ;;  %v32_v3 = vsel %vm31_vm0, %v28_v1, 0.0  ;;  %vm48_vm1 = vcmask 1041409  }
  0x15   :  { %v39_v4 = vsel %vm31_vm0, %v29_v2, 0.0  ;;  %v33_v5 = vrot.slane %v32_v3, 4  ;;  %s131_s0 = smov [#allocation6]  }
  0x16   :  { %v40_v6 = vrot.slane %v39_v4, 4  ;;  %s65_s20 = sshll.u32 %s131_s0, 4  ;;  %s66_s20 = int_to_ptr.vmem [resolvable:$true] %s65_s20 }
  0x17   :  { %v34_v7 = vadd.f32 %v33_v5, %v32_v3  ;;  %s101_s21 = scalar_lea.vmem %s66_s20, 32  ;;  %p106_p9 = scmp.lt.s32.totalorder %s66_s20, %s66_s20 }
  0x18   :  { %v41_v8 = vadd.f32 %v40_v6, %v39_v4  ;;  %p102_p8 = scmp.ne.s32.totalorder %s66_s20, %s101_s21  ;;  %p107_p10 = scmp.lt.s32.totalorder %s101_s21, %s101_s21 }
  0x19   :  { %v35_v9 = vrot.slane %v34_v7, 2 }
  0x1a   :  { %v42_v10 = vrot.slane %v41_v8, 2  ;;  %p108_p11 = por %p107_p10, %p106_p9 }
  0x1b   :  { %v36_v11 = vadd.f32 %v35_v9, %v34_v7  ;;  %v30_v15 = vld [vmem:[#allocation2] sm:$0x3] }
  0x1c   :  { %v43_v12 = vadd.f32 %v42_v10, %v41_v8  ;;  %p109_p12 = pnand %p108_p11, %p102_p8 }
  0x1d   :  { %v37_v13 = vrot.slane %v36_v11, 1 }
  0x1e   :  { %v44_v14 = vrot.slane %v43_v12, 1 }
  0x1f   :  { %v38_v16 = vadd.f32 %v37_v13, %v36_v11 }
  0x20   :  { %v45_v17 = vadd.f32 %v44_v14, %v43_v12 }
  0x22   :  { %v49_v18 = vsel %vm48_vm1, %v45_v17, %v38_v16 }
  0x23   :  { %v51_v19 = vadd.f32 %v49_v18, %v30_v15 }
  0x25   :  { %52 = vst [vmem:[#allocation2] sm:$0x3] %v51_v19 }
  0x2c   :  { %v56_v20 = vld [vmem:[#allocation2] sm:$0x3] }
  0x2d   :  { %v57_v21 = vmul.f32 0.125, %v56_v20 }
  0x2f   :  { %58 = vst [vmem:[#allocation6] sm:$0x3] %v57_v21 }
  0x30   :  { %112 = shalt.err (!%p109_p12)
}
  0x31   :  { %s113_s24 = scalar_lea.hbm %s167_s1, 32 }
  0x32   :  { %p114_p13 = scmp.ne.s32.totalorder %s167_s1, %s113_s24  ;;  %p117_p0 = scmp.lt.u32.totalorder %s113_s24, %s167_s1 }
  0x34   :  { %p119_p1 = pnand %p117_p0, %p114_p13 }
  0x36   :  { %122 = shalt.err (!%p119_p1)
}
  0x37   :  { %68 = dma.vmem_to_hbm [thread:$0]  %s66_s20, 32, %s167_s1, [#allocation5]  }
  0x38   :  { %125 = dma.done.wait [#allocation5], 32  }
  0x39   :  { %126 = vsyncadd [#allocation5], 4294967264 }
  0x3a   :  { %72 = vsyncpa [#allocation4], 1 }
  0x3b   :  { %73 = vsyncpa [#allocation5], 1 }

</bundles_post_ra>
